<compile_context>
chip_gen: v7x
topology: tpu7x:2x2x1
jax: 0.10.0
libtpu: 0.0.40
codegen_flags: <defaults>
</compile_context>

<pallas_src>
import functools

import jax
import jax.numpy as jnp
from jax.experimental import pallas as pl
from jax.experimental.pallas import tpu as pltpu


def _round_up(x, m):
    return (x + m - 1) // m * m


def _item_module_kernel(counts_ref, table_ref, o_ref, *, feature_count, emb_pad):
    """Fused EmbeddingSumConcat (F small matmuls) + F.normalize (row L2 norm).

    counts_ref: [F, Bt, V_pad] bf16  counts[f, b, v] = multiplicity of id v in
                                     feature f of batch row b
    table_ref:  [V_pad, E_pad] bf16  shared embedding table (resident block)
    o_ref:      [Bt, F*E_pad]  bf16  row b = normalized concat of the F
                                     per-feature embedding sums
    """
    table = table_ref[...]
    # One MXU matmul per feature (M=Bt, K=V_pad, N=E_pad), f32 accumulation.
    parts = [
        jnp.dot(counts_ref[f], table, preferred_element_type=jnp.float32)
        for f in range(feature_count)
    ]                                                       # F x [Bt, E_pad] f32

    # ||concat_f emb_f||^2 = sum_f ||emb_f||^2 : VPU squares/adds + one lane
    # reduce. Zero-padded E columns contribute nothing to the norm.
    sq = parts[0] * parts[0]
    for p in parts[1:]:
        sq = sq + p * p
    sq = jnp.sum(sq, axis=-1, keepdims=True)                # [Bt, 1]

    # x / max(||x||, eps) == x * rsqrt(max(||x||^2, eps^2)); rsqrt on the EUP.
    inv = jax.lax.rsqrt(jnp.maximum(sq, 1e-24))             # eps = 1e-12

    # Lane-dense 128-wide stores into per-feature column slabs.
    for f, p in enumerate(parts):
        o_ref[:, f * emb_pad:(f + 1) * emb_pad] = (p * inv).astype(o_ref.dtype)


def item_module_forward(ids, emb_table):
    """ids: [B, F, NNZ] int32, emb_table: [V, E] f32 -> [B, F*E] f32."""
    B, F, NNZ = ids.shape
    V, E = emb_table.shape

    # ---- glue (plain JAX): sparse ids -> per-(feature, row) count vectors ----
    # Scatter-add (no [B, F, NNZ, V] one-hot); repeated ids accumulate, matching
    # the sum combiner. Counts <= NNZ are exact in bf16 (integer-exact to 256).
    # TODO(synk): at realistic hashed-vocab sizes this dense-counts + XLA
    #             scatter formulation is the limiter; the production kernel
    #             would scalar-prefetch the ids (PrefetchScalarGridSpec) and
    #             gather+sum embedding rows from the HBM table instead.
    ids_fb = jnp.transpose(ids, (1, 0, 2)).reshape(F * B, NNZ)   # row = f*B + b
    rows = jnp.arange(F * B, dtype=jnp.int32)[:, None]
    counts = jnp.zeros((F * B, V), jnp.float32).at[rows, ids_fb].add(1.0)
    counts = counts.reshape(F, B, V).astype(jnp.bfloat16)

    # Lane-dense padding: E -> E_pad (unmasked 128-wide output stores) and
    # V -> V_pad (lane-dense counts loads, full MXU K pass). Zero rows/cols are
    # inert for both the sums and the norm.
    E_pad = _round_up(E, 128)
    V_pad = _round_up(V, 128)
    table = jnp.pad(emb_table.astype(jnp.bfloat16),
                    ((0, V_pad - V), (0, E_pad - E)))

    # Tile the batch: largest power-of-two tile that (a) fits a conservative
    # per-step VMEM budget and (b) still leaves ~4 grid steps; then pad the
    # batch up to a multiple of the tile instead of shrinking the tile. Force
    # >= 2 grid steps so v7x's two TensorCores both get work.
    B_pad = _round_up(B, 8)
    row_bytes = 2 * (F * V_pad * 2 + F * E_pad * 2)  # dbl-buffered counts + out
    vmem_budget = 24 * 1024 * 1024
    max_tile = max(8, min(256, vmem_budget // row_bytes) // 8 * 8)
    target_tile = max(8, B_pad // 4)
    batch_tile = 8
    while batch_tile * 2 <= min(max_tile, target_tile):
        batch_tile *= 2
    B_pad = _round_up(max(B_pad, 2 * batch_tile), batch_tile)
    counts = jnp.pad(counts, ((0, 0), (0, B_pad - B), (0, V_pad - V)))

    step_bytes = (2 * F * batch_tile * V_pad * 2     # counts double buffer
                  + 2 * batch_tile * F * E_pad * 2   # output double buffer
                  + 2 * V_pad * E_pad * 2)           # table (double-buffered)
    # TODO(synk): at realistic hashed-vocab V, give the table BlockSpec
    #             pipeline_mode=pl.Buffered(1) (constant index_map -> single
    #             buffer) to halve its VMEM footprint on v7x.

    out_pad = pl.pallas_call(
        functools.partial(_item_module_kernel, feature_count=F, emb_pad=E_pad),
        out_shape=jax.ShapeDtypeStruct((B_pad, F * E_pad), jnp.bfloat16),
        grid=(B_pad // batch_tile,),
        in_specs=[
            # counts: one (F, batch_tile, V_pad) block per grid step (pipelined)
            pl.BlockSpec((F, batch_tile, V_pad), lambda i: (0, i, 0)),
            # table: same block every step -> stays resident in VMEM
            pl.BlockSpec((V_pad, E_pad), lambda i: (0, 0)),
        ],
        out_specs=pl.BlockSpec((batch_tile, F * E_pad), lambda i: (i, 0)),
        compiler_params=pltpu.CompilerParams(
            # batch tiles are independent -> shard across TensorCores on v7x
            dimension_semantics=("parallel",),
            vmem_limit_bytes=int(max(32 * 1024 * 1024, 2 * step_bytes)),
        ),
        cost_estimate=pl.CostEstimate(
            flops=2 * B_pad * F * V_pad * E_pad,
            transcendentals=B_pad,
            bytes_accessed=int(counts.size * 2 + table.size * 2
                               + B_pad * F * E_pad * 2),
        ),
    )(counts, table)

    # Layout plumbing outside the kernel: f32 cast, drop batch/E padding,
    # flatten the per-feature slabs into the [B, F*E] concatenated row.
    out = out_pad.astype(jnp.float32).reshape(B_pad, F, E_pad)[:B, :, :E]
    return out.reshape(B, F * E)


def item_module_reference(ids, emb_table):
    """Pure-JAX f32 reference of the PyTorch forward (sum-concat + F.normalize)."""
    B, F, NNZ = ids.shape
    V, E = emb_table.shape
    gathered = emb_table[ids]                  # [B, F, NNZ, E]
    summed = gathered.sum(axis=2)              # [B, F, E]
    flat = summed.reshape(B, F * E)            # concat over features
    norm = jnp.maximum(jnp.linalg.norm(flat, axis=1, keepdims=True), 1e-12)
    return flat / norm


if __name__ == "__main__":
    # Small deterministic config consistent with the module:
    #   emb_size = 16, feature_count = 4, vocab = 64, batch = 8, nnz/feature = 5
    B, F, NNZ = 8, 4, 5
    V, E = 64, 16

    key = jax.random.PRNGKey(0)
    k_ids, k_emb = jax.random.split(key)

    # Synthetic sparse feature ids (stand-in for the string-hashed sparse input).
    ids = jax.random.randint(k_ids, (B, F, NNZ), 0, V, dtype=jnp.int32)
    # NormalTensorInitializer(var=0.0001) -> std = 0.01
    emb_table = 0.01 * jax.random.normal(k_emb, (V, E), dtype=jnp.float32)

    out = jax.block_until_ready(item_module_forward(ids, emb_table))
    ref = item_module_reference(ids, emb_table)

    assert out.shape == (B, F * E)
    # bf16 table/counts/output with f32 MXU accumulation -> relaxed tolerance.
    assert jnp.allclose(out, ref, atol=1e-2, rtol=1e-2), "Pallas kernel mismatch vs reference"

    print("KERNEL_OK")
</pallas_src>

<mosaic_0001>
module attributes {stable_mosaic.version = 11 : i64} {
  func.func @_item_module_kernel(%arg0: i32, %arg1: memref<4x8x128xbf16, #tpu.memory_space<vmem>>, %arg2: memref<128x128xbf16, #tpu.memory_space<vmem>>, %arg3: memref<8x512xbf16, #tpu.memory_space<vmem>>) attributes {dimension_semantics = [#tpu.dimension_semantics<parallel>], iteration_bounds = array<i64: 2>, scalar_prefetch = 0 : i64, scratch_operands = 0 : i64, tpu.core_type = #tpu.core_type<tc>, window_params = [{transform_indices = @transform_0, window_bounds = array<i64: 4, 8, 128>}, {pipeline_mode = #tpu.pipeline_mode<synchronous>, transform_indices = @transform_1, window_bounds = array<i64: 128, 128>}, {transform_indices = @transform_2, window_bounds = array<i64: 8, 512>}]} {
    %c0 = arith.constant 0 : index
    %c0_0 = arith.constant 0 : index
    %0 = vector.load %arg2[%c0, %c0_0] : memref<128x128xbf16, #tpu.memory_space<vmem>>, vector<128x128xbf16>
    %c0_1 = arith.constant 0 : index
    %c0_2 = arith.constant 0 : index
    %c0_3 = arith.constant 0 : index
    %1 = vector.load %arg1[%c0_1, %c0_2, %c0_3] : memref<4x8x128xbf16, #tpu.memory_space<vmem>>, vector<1x8x128xbf16>
    %2 = vector.shape_cast %1 : vector<1x8x128xbf16> to vector<8x128xbf16>
    %cst = arith.constant dense<0.000000e+00> : vector<8x128xf32>
    %3 = tpu.matmul %2, %0, %cst {dimension_numbers = #tpu.dot_dimension_numbers<[1], [0], [0], [1], [0, 0, 1, 1], [], []>} : vector<8x128xbf16>, vector<128x128xbf16>, vector<8x128xf32> -> vector<8x128xf32>
    %c1 = arith.constant 1 : index
    %c0_4 = arith.constant 0 : index
    %c0_5 = arith.constant 0 : index
    %4 = vector.load %arg1[%c1, %c0_4, %c0_5] : memref<4x8x128xbf16, #tpu.memory_space<vmem>>, vector<1x8x128xbf16>
    %5 = vector.shape_cast %4 : vector<1x8x128xbf16> to vector<8x128xbf16>
    %cst_6 = arith.constant dense<0.000000e+00> : vector<8x128xf32>
    %6 = tpu.matmul %5, %0, %cst_6 {dimension_numbers = #tpu.dot_dimension_numbers<[1], [0], [0], [1], [0, 0, 1, 1], [], []>} : vector<8x128xbf16>, vector<128x128xbf16>, vector<8x128xf32> -> vector<8x128xf32>
    %c2 = arith.constant 2 : index
    %c0_7 = arith.constant 0 : index
    %c0_8 = arith.constant 0 : index
    %7 = vector.load %arg1[%c2, %c0_7, %c0_8] : memref<4x8x128xbf16, #tpu.memory_space<vmem>>, vector<1x8x128xbf16>
    %8 = vector.shape_cast %7 : vector<1x8x128xbf16> to vector<8x128xbf16>
    %cst_9 = arith.constant dense<0.000000e+00> : vector<8x128xf32>
    %9 = tpu.matmul %8, %0, %cst_9 {dimension_numbers = #tpu.dot_dimension_numbers<[1], [0], [0], [1], [0, 0, 1, 1], [], []>} : vector<8x128xbf16>, vector<128x128xbf16>, vector<8x128xf32> -> vector<8x128xf32>
    %c3 = arith.constant 3 : index
    %c0_10 = arith.constant 0 : index
    %c0_11 = arith.constant 0 : index
    %10 = vector.load %arg1[%c3, %c0_10, %c0_11] : memref<4x8x128xbf16, #tpu.memory_space<vmem>>, vector<1x8x128xbf16>
    %11 = vector.shape_cast %10 : vector<1x8x128xbf16> to vector<8x128xbf16>
    %cst_12 = arith.constant dense<0.000000e+00> : vector<8x128xf32>
    %12 = tpu.matmul %11, %0, %cst_12 {dimension_numbers = #tpu.dot_dimension_numbers<[1], [0], [0], [1], [0, 0, 1, 1], [], []>} : vector<8x128xbf16>, vector<128x128xbf16>, vector<8x128xf32> -> vector<8x128xf32>
    %13 = arith.mulf %3, %3 : vector<8x128xf32>
    %14 = arith.mulf %6, %6 : vector<8x128xf32>
    %15 = arith.addf %13, %14 : vector<8x128xf32>
    %16 = arith.mulf %9, %9 : vector<8x128xf32>
    %17 = arith.addf %15, %16 : vector<8x128xf32>
    %18 = arith.mulf %12, %12 : vector<8x128xf32>
    %19 = arith.addf %17, %18 : vector<8x128xf32>
    %cst_13 = arith.constant dense<0.000000e+00> : vector<8xf32>
    %20 = vector.multi_reduction <add>, %19, %cst_13 [1] : vector<8x128xf32> to vector<8xf32>
    %21 = vector.shape_cast %20 : vector<8xf32> to vector<8x1xf32>
    %cst_14 = arith.constant 1.000000e-24 : f32
    %22 = vector.broadcast %cst_14 : f32 to vector<8x1xf32>
    %23 = arith.maximumf %21, %22 : vector<8x1xf32>
    %24 = math.rsqrt %23 : vector<8x1xf32>
    %25 = vector.broadcast %24 : vector<8x1xf32> to vector<8x128xf32>
    %26 = arith.mulf %3, %25 : vector<8x128xf32>
    %27 = arith.truncf %26 : vector<8x128xf32> to vector<8x128xbf16>
    %c0_15 = arith.constant 0 : index
    %c0_16 = arith.constant 0 : index
    %28 = vector.load %arg3[%c0_15, %c0_16] : memref<8x512xbf16, #tpu.memory_space<vmem>>, vector<8x128xbf16>
    tpu.vector_store %arg3[%c0_15, %c0_16], %27 {strides = array<i32>} : memref<8x512xbf16, #tpu.memory_space<vmem>>, vector<8x128xbf16>,
    %29 = vector.broadcast %24 : vector<8x1xf32> to vector<8x128xf32>
    %30 = arith.mulf %6, %29 : vector<8x128xf32>
    %31 = arith.truncf %30 : vector<8x128xf32> to vector<8x128xbf16>
    %c0_17 = arith.constant 0 : index
    %c128 = arith.constant 128 : index
    %32 = vector.load %arg3[%c0_17, %c128] : memref<8x512xbf16, #tpu.memory_space<vmem>>, vector<8x128xbf16>
    tpu.vector_store %arg3[%c0_17, %c128], %31 {strides = array<i32>} : memref<8x512xbf16, #tpu.memory_space<vmem>>, vector<8x128xbf16>,
    %33 = vector.broadcast %24 : vector<8x1xf32> to vector<8x128xf32>
    %34 = arith.mulf %9, %33 : vector<8x128xf32>
    %35 = arith.truncf %34 : vector<8x128xf32> to vector<8x128xbf16>
    %c0_18 = arith.constant 0 : index
    %c256 = arith.constant 256 : index
    %36 = vector.load %arg3[%c0_18, %c256] : memref<8x512xbf16, #tpu.memory_space<vmem>>, vector<8x128xbf16>
    tpu.vector_store %arg3[%c0_18, %c256], %35 {strides = array<i32>} : memref<8x512xbf16, #tpu.memory_space<vmem>>, vector<8x128xbf16>,
    %37 = vector.broadcast %24 : vector<8x1xf32> to vector<8x128xf32>
    %38 = arith.mulf %12, %37 : vector<8x128xf32>
    %39 = arith.truncf %38 : vector<8x128xf32> to vector<8x128xbf16>
    %c0_19 = arith.constant 0 : index
    %c384 = arith.constant 384 : index
    %40 = vector.load %arg3[%c0_19, %c384] : memref<8x512xbf16, #tpu.memory_space<vmem>>, vector<8x128xbf16>
    tpu.vector_store %arg3[%c0_19, %c384], %39 {strides = array<i32>} : memref<8x512xbf16, #tpu.memory_space<vmem>>, vector<8x128xbf16>,
    return
  }
  func.func @transform_0(%arg0: i32) -> (i32, i32, i32) {
    %c0_i32 = arith.constant 0 : i32
    %c0_i32_0 = arith.constant 0 : i32
    %c0_i32_1 = arith.constant 0 : i32
    return %c0_i32, %arg0, %c0_i32_0 : i32, i32, i32
  }
  func.func @transform_1(%arg0: i32) -> (i32, i32) {
    %c0_i32 = arith.constant 0 : i32
    %c0_i32_0 = arith.constant 0 : i32
    %c0_i32_1 = arith.constant 0 : i32
    return %c0_i32, %c0_i32_0 : i32, i32
  }
  func.func @transform_2(%arg0: i32) -> (i32, i32) {
    %c0_i32 = arith.constant 0 : i32
    %c0_i32_0 = arith.constant 0 : i32
    return %arg0, %c0_i32 : i32, i32
  }
}

</mosaic_0001>

<bundles_post_ra>
// kernel: tpu_custom_call.1
= control target key start
LH: loop header
LB: loop body
LE: loop exit
PB: predicated region body
PF: predicated region fallthrough
CT: control target
= control target key end

     0   :  { %7 = vsyncpa [#allocation3], 0  ;;  %s1158_s0 = inlined_call_operand.hbm [shape: bf16[4,16,128], index: 0, kind: input, shape index: {}]   ;;  %s1159_s1 = inlined_call_operand.hbm [shape: bf16[128,128], index: 1, kind: input, shape index: {}]   ;;  %s1160_s2 = inlined_call_operand.hbm [shape: bf16[16,512], index: 2, kind: output, shape index: {}]  }
   0x1   :  { %9 = vsyncpa [#allocation3 + $0x1], 0 }
   0x2   :  { %10 = vsyncpa [#allocation6], 0 }
   0x3   :  { %11 = vsyncpa [#allocation4], 0 }
   0x4   :  { %13 = vsyncpa [#allocation4 + $0x1], 0  ;;  %s905_s9 = smov 0   ;;  %s907_s10 = smov 0  }
   0x5   :  { %s909_s11 = smov 0   ;;  %s911_s12 = smov 0  }
   0x6 LB: > { %s926_s13 = sadd.s32 4294967295, %s880_s12   ;;  %s526_s14 = sadd.s32 4294967294, %s880_s12   ;;  %s880_s12 = sphi %s911_s12, %s1184_s12   ;;  %s876_s11 = sphi %s909_s11, %s1183_s11   ;;  %s872_s10 = sphi %s907_s10, %s1182_s10   ;;  %s868_s9 = sphi %s905_s9, %s1181_s9  }
   0x7   : > { %s930_s15 = sadd.s32 1, %s880_s12   ;;  %s26_s16 = sadd.s32 1, %s876_s11 }
   0x8   : > { %s23_s17 = ssub.s32 %s880_s12, %s930_s15  ;;  %p33_p0 = scmp.ne.s32.totalorder %s876_s11, %s872_s10 }
   0x9   : > { %p24_p1 = scmp.eq.s32.totalorder %s23_s17, 0  ;;  %p34_p2 = scmp.eq.s32.totalorder %s880_s12, 0 }
   0xa   : > { %p39_p3 = scmp.ne.s32.totalorder %s872_s10, %s868_s9  ;;  %p1161_p4 = scmp.eq.s32.totalorder %s926_s13, 0 }
   0xb   : > { %s942_s18 = scalar_select %p24_p1, %s876_s11, %s26_s16  }
   0xc   : > { %p944_p5 = por %p34_p2, %p33_p0  ;;  %p950_p6 = por %p1161_p4, %p39_p3 }
   0xd   : > { %p84_p7 = scmp.eq.s32.totalorder %s926_s13, 1  ;;  %p90_p8 = scmp.eq.s32.totalorder %s526_s14, 1 }
   0xe   : > { %s1165_s19 = scalar_select %p944_p5, 1, 0 }
   0xf   : > { %s1166_s20 = scalar_select %p950_p6, 1, 0 }
  0x10   : > { %p527_p9 = scmp.ge.s32.totalorder %s880_s12, 1  ;;  %p97_p10 = scmp.lt.s32.totalorder %s880_s12, 3 }
  0x11   : > { %p957_p11 = por %p84_p7, %p33_p0  ;;  %p961_p12 = por %p90_p8, %p39_p3 }
  0x12   : > { %p965_p13 = pnand %p527_p9, %p97_p10  ;;  %s882_s24 = smov [#allocation5]  }
  0x13   : > { %s1167_s21 = scalar_select %p957_p11, 1, 0 }
  0x14   : > { %s1168_s22 = scalar_select %p961_p12, 1, 0 }
  0x15   : > { %s1169_s23 = scalar_select %p965_p13, 1, 0 }
  0x16   : > { %p688_p1 = pneg %p965_p13  ;;  %s109_s25 = sshll.u32 %s882_s24, 4  ;;  %s110_s25 = int_to_ptr.vmem [resolvable:$true] %s109_s25 }
  0x17   : > { %s123_s27 = sand.u32 1, %s876_s11   ;;  %s752_s30 = scalar_lea.hbm %s1159_s1, 1024 }
  0x18   : > { %p973_p2 = pnand %p688_p1, %p1161_p4  ;;  %p753_p7 = scmp.ne.s32.totalorder %s1159_s1, %s752_s30 }
  0x19   : > { %p759_p1 = scmp.lt.u32.totalorder %s752_s30, %s1159_s1 }
  0x1a   : > { %p754_p8 = pneg %p973_p2 }
  0x1c   : > { %p755_p9 = pnand %p754_p8, %p753_p7 }
  0x1e   : > { %p756_p10 = pneg %p755_p9 }
  0x20   : > { %p761_p4 = pnand %p759_p1, %p756_p10 }
  0x22   : > { %764 = shalt.err (!%p761_p4)
}
  0x23   : > { %s765_s7 = scalar_lea.vmem %s110_s25, 1024  ;;  %p773_p11 = scmp.lt.s32.totalorder %s110_s25, %s110_s25 }
  0x24   : > { %p766_p0 = scmp.ne.s32.totalorder %s110_s25, %s765_s7  ;;  %p774_p6 = scmp.lt.s32.totalorder %s765_s7, %s765_s7 }
  0x26   : > { %p768_p3 = pnand %p766_p0, %p754_p8  ;;  %p775_p13 = por %p774_p6, %p773_p11 }
  0x28   : > { %p769_p12 = pneg %p768_p3 }
  0x2a   : > { %p776_p5 = pnand %p775_p13, %p769_p12 }
  0x2c   : > { %779 = shalt.err (!%p776_p5)
}
  0x2d   : > { %s883_s8 = smov 64   ;;  %s884_s14 = smov 4  }
  0x2e   : > { %691 = dma.hbm_to_vmem [thread:$0]  (!%p973_p2), %s1159_s1, 1024, %s110_s25, [#allocation6], %s883_s8, %s883_s8, %s884_s14  }
  0x2f   : > { %p1171_p4 = scmp.ne.s32.totalorder %s1165_s19, 0  ;;  %p1172_p0 = scmp.lt.s32.totalorder %s880_s12, 2 }
  0x30   : > { %s530_s28 = sshll.u32 %s123_s27, 4  ;;  %s531_s29 = sshll.u32 %s880_s12, 6 }
  0x31   : > { %p1003_p3 = pnand %p1172_p0, %p1171_p4  ;;  %s1011_s26 = scalar_lea.hbm %s1158_s0, %s531_s29 }
  0x32   : > { %s127_s25 = scalar_lea.vmem [#allocation2], %s530_s28  ;;  %s1015_s4 = scalar_lea.sflag [#allocation3], %s123_s27 }
  0x33   : > { %s133_s19 = sshll.u32 %s127_s25, 4  ;;  %s780_s5 = scalar_lea.hbm %s1011_s26, 256  ;;  %s1013_s19 = int_to_ptr.vmem [resolvable:$true] %s133_s19 }
  0x34   : > { %p781_p5 = scmp.ne.s32.totalorder %s1011_s26, %s780_s5  ;;  %p782_p6 = pneg %p1003_p3 }
  0x35   : > { %s785_s16 = scalar_lea.hbm %s1158_s0, 512  ;;  %p786_p13 = scmp.lt.u32.totalorder %s1011_s26, %s1158_s0 }
  0x36   : > { %p783_p11 = pnand %p782_p6, %p781_p5  ;;  %p787_p2 = scmp.lt.u32.totalorder %s785_s16, %s780_s5 }
  0x37   : > { %p789_p8 = scmp.lt.u32.totalorder %s780_s5, %s1011_s26 }
  0x38   : > { %p784_p12 = pneg %p783_p11  ;;  %p788_p7 = por %p787_p2, %p786_p13 }
  0x3a   : > { %p790_p9 = por %p789_p8, %p788_p7 }
  0x3c   : > { %p791_p10 = pnand %p790_p9, %p784_p12 }
  0x3e   : > { %794 = shalt.err (!%p791_p10)
}
  0x3f   : > { %s795_s27 = scalar_lea.vmem %s1013_s19, 256  ;;  %s885_s28 = smov [#allocation2]  }
  0x40   : > { %p796_p1 = scmp.ne.s32.totalorder %s1013_s19, %s795_s27  ;;  %s800_s30 = sshll.u32 %s885_s28, 4  ;;  %s801_s30 = int_to_ptr.vmem [resolvable:$false] %s800_s30 }
  0x41   : > { %s802_s3 = scalar_lea.vmem %s801_s30, 512  ;;  %p803_p5 = scmp.lt.s32.totalorder %s1013_s19, %s801_s30 }
  0x42   : > { %p798_p4 = pnand %p796_p1, %p782_p6  ;;  %p804_p11 = scmp.lt.s32.totalorder %s802_s3, %s795_s27 }
  0x44   : > { %p799_p0 = pneg %p798_p4  ;;  %p805_p13 = por %p804_p11, %p803_p5 }
  0x46   : > { %p806_p2 = pnand %p805_p13, %p799_p0 }
  0x48   : > { %809 = shalt.err (!%p806_p2)
}
  0x49   : > { %s886_s25 = smov 128   ;;  %p1174_p6 = scmp.ne.s32.totalorder %s1169_s23, 0 }
  0x4a   : > { %695 = dma.hbm_to_vmem [thread:$0]  (!%p1003_p3), %s1011_s26, 256, %s1013_s19, %s1015_s4, %s886_s25, %s883_s8, %s884_s14  }
  0x4b   : > { %145 = sbr.rel (%p1174_p6) target bundleno = 543 (0x21f), region = 28  ;;  %s1048_s5 = sand.u32 (!%p1174_p6), 1, %s872_s10  }
  0x4c   : > { %s533_s6 = sshll.u32 (!%p1174_p6), %s1048_s5, 4  ;;  %s148_s7 = scalar_lea.sflag (!%p1174_p6), [#allocation3], %s1048_s5 }
  0x4d   : > { %s1054_s24 = scalar_lea.vmem (!%p1174_p6), [#allocation2], %s533_s6  ;;  %p1175_p12 = scmp.ne.s32.totalorder (!%p1174_p6), %s1166_s20, 0 }
  0x52   : > { %855 = dma.done.wait (%p1175_p12), %s148_s7, 256  }
  0x53   : > { %857 = vsyncadd (%p1175_p12), %s148_s7, 4294967040  ;;  %p1176_p3 = scmp.eq.s32.totalorder %s926_s13, 0 }
  0x55   : > { %859 = dma.done.wait (%p1176_p3), [#allocation6], 1024   ;;  %p1177_p7 = pmov %p1176_p3 }
  0x56   : > { %v887_v0 = vmov 0.0   ;;  %vm888_vm0 = vmmov 0   ;;  %v742_v1 = vld [vmem:[#allocation5] sm:$0xff]   ;;  %v743_v2 = vld [vmem:[#allocation5 + $0x8] sm:$0xff]   ;;  %v744_v3 = vld [vmem:[#allocation5 + $0x10] sm:$0xff]   ;;  %s552_s20 = sshll.u32 %s926_s13, 8 }
  0x57   : > { %861 = vsyncadd (%p1177_p7), [#allocation6], 4294966272  ;;  %600 = vmatprep.subr.bf16.mxu0 %v887_v0  ;;  %620 = vmatprep.subr.bf16.mxu1 %v887_v0  ;;  %v745_v4 = vld [vmem:[#allocation5 + $0x18] sm:$0xff]   ;;  %v746_v5 = vld [vmem:[#allocation5 + $0x20] sm:$0xff]   ;;  %s175_s23 = scalar_lea.vmem [#allocation7], %s533_s6  ;;  %s1114_s19 = scalar_lea.hbm %s1160_s2, %s552_s20 }
  0x58   : > { %616 = vmatprep.mubr.msk.bf16.mxu0 %vm888_vm0, %v887_v0  ;;  %636 = vmatprep.mubr.msk.bf16.mxu1 %vm888_vm0, %v887_v0  ;;  %v747_v6 = vld [vmem:[#allocation5 + $0x28] sm:$0xff]   ;;  %v748_v7 = vld [vmem:[#allocation5 + $0x30] sm:$0xff]   ;;  %v749_v8 = vld [vmem:[#allocation5 + $0x38] sm:$0xff]   ;;  %s446_s8 = sshll.u32 %s175_s23, 4  ;;  %s432_s13 = scalar_lea.sflag [#allocation4], %s1048_s5  ;;  %s1116_s8 = int_to_ptr.vmem [resolvable:$true] %s446_s8 }
  0x59   : > { %601 = vmatpush3.bf16.msra.mxu0 %v742_v1  ;;  %621 = vmatpush3.bf16.msra.mxu1 %v742_v1  ;;  %v193_v9 = vld [vmem:[%s1054_s24] sm:$0xf]  ;;  %v544_v10 = vld [vmem:[%s1054_s24 + $0x4] sm:$0xf]  ;;  %v545_v11 = vld [vmem:[%s1054_s24 + $0x8] sm:$0xf] }
  0x5a   : > { %602 = vmatprep.subr.bf16.mxu0 %v887_v0  ;;  %622 = vmatprep.subr.bf16.mxu1 %v887_v0  ;;  %v546_v12 = vld [vmem:[%s1054_s24 + $0xc] sm:$0xf]  ;;  %s810_s4 = scalar_lea.vmem %s1116_s8, 256  ;;  %p1178_p9 = scmp.ne.s32.totalorder %s1167_s21, 0 }
  0x5b   : > { %p811_p8 = scmp.ne.s32.totalorder %s1116_s8, %s810_s4  ;;  %s889_s16 = smov [#allocation7]  }
  0x5c   : > { %s814_s17 = sshll.u32 %s889_s16, 4  ;;  %s815_s17 = int_to_ptr.vmem [resolvable:$false] %s814_s17 }
  0x5d   : > { %603 = vmatpush3.bf16.msra.mxu0 %v743_v2  ;;  %623 = vmatpush3.bf16.msra.mxu1 %v743_v2  ;;  %p812_p10 = pnand %p811_p8, %p1178_p9  ;;  %s816_s29 = scalar_lea.vmem %s815_s17, 512 }
  0x5e   : > { %604 = vmatprep.subr.bf16.mxu0 %v887_v0  ;;  %624 = vmatprep.subr.bf16.mxu1 %v887_v0  ;;  %p817_p4 = scmp.lt.s32.totalorder %s1116_s8, %s815_s17  ;;  %p818_p0 = scmp.lt.s32.totalorder %s816_s29, %s810_s4 }
  0x5f   : > { %p813_p1 = pneg %p812_p10 }
  0x60   : > { %p819_p5 = por %p818_p0, %p817_p4 }
  0x61   : > { %605 = vmatpush3.bf16.msra.mxu0 %v744_v3  ;;  %625 = vmatpush3.bf16.msra.mxu1 %v744_v3 }
  0x62   : > { %606 = vmatprep.subr.bf16.mxu0 %v887_v0  ;;  %626 = vmatprep.subr.bf16.mxu1 %v887_v0  ;;  %p820_p11 = pnand %p819_p5, %p813_p1 }
  0x65   : > { %607 = vmatpush3.bf16.msra.mxu0 %v745_v4  ;;  %627 = vmatpush3.bf16.msra.mxu1 %v745_v4 }
  0x66   : > { %608 = vmatprep.subr.bf16.mxu0 %v887_v0  ;;  %628 = vmatprep.subr.bf16.mxu1 %v887_v0 }
  0x69   : > { %609 = vmatpush3.bf16.msra.mxu0 %v746_v5  ;;  %629 = vmatpush3.bf16.msra.mxu1 %v746_v5 }
  0x6a   : > { %610 = vmatprep.subr.bf16.mxu0 %v887_v0  ;;  %630 = vmatprep.subr.bf16.mxu1 %v887_v0 }
  0x6d   : > { %611 = vmatpush3.bf16.msra.mxu0 %v747_v6  ;;  %631 = vmatpush3.bf16.msra.mxu1 %v747_v6 }
  0x6e   : > { %612 = vmatprep.subr.bf16.mxu0 %v887_v0  ;;  %632 = vmatprep.subr.bf16.mxu1 %v887_v0 }
  0x71   : > { %613 = vmatpush3.bf16.msra.mxu0 %v748_v7  ;;  %633 = vmatpush3.bf16.msra.mxu1 %v748_v7 }
  0x72   : > { %614 = vmatprep.subr.bf16.mxu0 %v887_v0  ;;  %634 = vmatprep.subr.bf16.mxu1 %v887_v0 }
  0x75   : > { %615 = vmatpush3.bf16.msra.mxu0 %v749_v8  ;;  %635 = vmatpush3.bf16.msra.mxu1 %v749_v8 }
  0x76   : > { %640 = vmatprep.subr.bf16.mxu0 %v887_v0  ;;  %660 = vmatprep.subr.bf16.mxu1 %v887_v0 }
  0x78   : > { %617 = vmatmul.mubr.bf16.vlgmr.msra.gmra.mrb[0].mxu0 %v193_v9  ;;  %637 = vmatmul.mubr.bf16.vlgmr.msra.gmra.mrb[0].mxu1 %v544_v10 }
  0x79   : > { %641 = vmatpush3.bf16.msra.mxu0 %v742_v1  ;;  %661 = vmatpush3.bf16.msra.mxu1 %v742_v1 }
  0x7a   : > { %642 = vmatprep.subr.bf16.mxu0 %v887_v0  ;;  %662 = vmatprep.subr.bf16.mxu1 %v887_v0 }
  0x7b   : > { %656 = vmatprep.mubr.msk.bf16.mxu0 %vm888_vm0, %v887_v0  ;;  %676 = vmatprep.mubr.msk.bf16.mxu1 %vm888_vm0, %v887_v0 }
  0x7d   : > { %643 = vmatpush3.bf16.msra.mxu0 %v743_v2  ;;  %663 = vmatpush3.bf16.msra.mxu1 %v743_v2 }
  0x7e   : > { %644 = vmatprep.subr.bf16.mxu0 %v887_v0  ;;  %664 = vmatprep.subr.bf16.mxu1 %v887_v0 }
  0x81   : > { %645 = vmatpush3.bf16.msra.mxu0 %v744_v3  ;;  %665 = vmatpush3.bf16.msra.mxu1 %v744_v3 }
  0x82   : > { %646 = vmatprep.subr.bf16.mxu0 %v887_v0  ;;  %666 = vmatprep.subr.bf16.mxu1 %v887_v0 }
  0x85   : > { %647 = vmatpush3.bf16.msra.mxu0 %v745_v4  ;;  %667 = vmatpush3.bf16.msra.mxu1 %v745_v4 }
  0x86   : > { %648 = vmatprep.subr.bf16.mxu0 %v887_v0  ;;  %668 = vmatprep.subr.bf16.mxu1 %v887_v0 }
  0x89   : > { %649 = vmatpush3.bf16.msra.mxu0 %v746_v5  ;;  %669 = vmatpush3.bf16.msra.mxu1 %v746_v5 }
  0x8a   : > { %650 = vmatprep.subr.bf16.mxu0 %v887_v0  ;;  %670 = vmatprep.subr.bf16.mxu1 %v887_v0 }
  0x8d   : > { %651 = vmatpush3.bf16.msra.mxu0 %v747_v6  ;;  %671 = vmatpush3.bf16.msra.mxu1 %v747_v6 }
  0x8e   : > { %652 = vmatprep.subr.bf16.mxu0 %v887_v0  ;;  %672 = vmatprep.subr.bf16.mxu1 %v887_v0 }
  0x91   : > { %653 = vmatpush3.bf16.msra.mxu0 %v748_v7  ;;  %673 = vmatpush3.bf16.msra.mxu1 %v748_v7 }
  0x92   : > { %654 = vmatprep.subr.bf16.mxu0 %v887_v0  ;;  %674 = vmatprep.subr.bf16.mxu1 %v887_v0 }
  0x95   : > { %655 = vmatpush3.bf16.msra.mxu0 %v749_v8  ;;  %675 = vmatpush3.bf16.msra.mxu1 %v749_v8 }
  0x98   : > { %657 = vmatmul.mubr.bf16.vlgmr.msra.gmra.mrb[4].mxu0 %v545_v11  ;;  %677 = vmatmul.mubr.bf16.vlgmr.msra.gmra.mrb[4].mxu1 %v546_v12 }
 0x14b   : > { %v276_v13 = vpop.f32.mrb[0].mxu0  ;;  %v318_v14 = vpop.f32.mrb[0].mxu1 }
 0x14c   : > { %v408_v15 = vmul.f32 %v276_v13, %v276_v13  ;;  %v409_v16 = vmul.f32 %v318_v14, %v318_v14  ;;  %v618_v17 = vpop.f32.mrb[1].mxu0  ;;  %v638_v18 = vpop.f32.mrb[1].mxu1 }
 0x14d   : > { %v279_v19 = vpop.f32.mrb[2].mxu0  ;;  %v321_v20 = vpop.f32.mrb[2].mxu1 }
 0x14e   : > { %v410_v21 = vadd.f32 %v409_v16, %v408_v15  ;;  %v619_v22 = vpop.f32.mrb[3].mxu0  ;;  %v639_v23 = vpop.f32.mrb[3].mxu1 }
 0x16b   : > { %v360_v24 = vpop.f32.mrb[4].mxu0  ;;  %v402_v25 = vpop.f32.mrb[4].mxu1 }
 0x16c   : > { %v411_v26 = vmul.f32 %v360_v24, %v360_v24  ;;  %v413_v27 = vmul.f32 %v402_v25, %v402_v25  ;;  %v658_v28 = vpop.f32.mrb[5].mxu0  ;;  %v678_v29 = vpop.f32.mrb[5].mxu1 }
 0x16d   : > { %v363_v30 = vpop.f32.mrb[6].mxu0  ;;  %v405_v31 = vpop.f32.mrb[6].mxu1 }
 0x16e   : > { %v659_v32 = vpop.f32.mrb[7].mxu0  ;;  %v679_v33 = vpop.f32.mrb[7].mxu1  ;;  %v412_v34 = vadd.f32 %v411_v26, %v410_v21 }
 0x170   : > { %v414_v35 = vadd.f32 %v413_v27, %v412_v34 }
 0x172   : > { %415 = vadd.xlane.f32.xlu0 %v414_v35 }
 0x1ff   : > { %v416_v36 = vpop.xlane.xlu0 %415 }
 0x200   : > { %v417_v37 = vmax.f32 %v416_v36, 1e-24 }
 0x202   : > { %750 = vrsqrt.f32 %v417_v37 }
 0x20c   : > { %v751_v38 = vpop.eup %750 }
 0x20d   : > { %v419_v39 = vmul.f32 %v751_v38, %v276_v13  ;;  %v422_v40 = vmul.f32 %v751_v38, %v318_v14  ;;  %v425_v41 = vmul.f32 %v751_v38, %v360_v24  ;;  %v428_v42 = vmul.f32 %v751_v38, %v402_v25 }
 0x20f   : > { %v556_v43 = vpack.c.bf16 %v422_v40, %v419_v39  ;;  %v561_v44 = vpack.c.bf16 %v428_v42, %v425_v41 }
 0x211   : > { %557 = vst [vmem:[%s175_s23] sm:$0xff] %v556_v43   ;;  %563 = vst [vmem:[%s175_s23 + $0x8] sm:$0xff] %v561_v44  }
 0x212   : > { %823 = shalt.err (!%p820_p11)
}
 0x213   : > { %s824_s27 = scalar_lea.hbm %s1114_s19, 256  ;;  %s828_s3 = scalar_lea.hbm %s1160_s2, 512 }
 0x214   : > { %p825_p13 = scmp.ne.s32.totalorder %s1114_s19, %s824_s27  ;;  %p829_p12 = scmp.lt.u32.totalorder %s1114_s19, %s1160_s2 }
 0x215   : > { %p830_p3 = scmp.lt.u32.totalorder %s828_s3, %s824_s27  ;;  %p832_p8 = scmp.lt.u32.totalorder %s824_s27, %s1114_s19 }
 0x216   : > { %p826_p2 = pnand %p825_p13, %p1178_p9 }
 0x217   : > { %p831_p7 = por %p830_p3, %p829_p12 }
 0x218   : > { %p827_p6 = pneg %p826_p2 }
 0x219   : > { %p833_p10 = por %p832_p8, %p831_p7 }
 0x21b   : > { %p834_p1 = pnand %p833_p10, %p827_p6 }
 0x21d   : > { %837 = shalt.err (!%p834_p1)
}
 0x21e   : > { %686 = dma.vmem_to_hbm [thread:$0]  (%p1178_p9), %s1116_s8, 256, %s1114_s19, %s432_s13  }
 0x21f PF: > { %s458_s6 = sand.u32 1, %s868_s9   ;;  %p1179_p4 = scmp.ne.s32.totalorder %s1168_s22, 0 }
 0x220   : > { %p1180_p0 = scmp.ge.s32.totalorder %s880_s12, 2  ;;  %s459_s7 = scalar_lea.sflag [#allocation4], %s458_s6 }
 0x222   : > { %p697_p5 = pnand %p1180_p0, %p1179_p4 }
 0x224   : > { %863 = dma.done.wait (!%p697_p5), %s459_s7, 256  }
 0x225   : > { %865 = vsyncadd (!%p697_p5), %s459_s7, 4294967040  ;;  %p16_p11 = scmp.ge.s32.totalorder %s930_s15, 4   ;;  %s1181_s9 = smov %s872_s10 }
 0x226   : > { %s1182_s10 = smov %s876_s11  ;;  %s1183_s11 = smov %s942_s18 }
 0x227   : > { %s1184_s12 = smov %s930_s15  ;;  %18 = sbr.rel (!%p16_p11) target bundleno = 6 (0x6), region = 80 }
 0x22e   :  { %464 = vsyncpa [#allocation3], 1 }
 0x22f   :  { %466 = vsyncpa [#allocation3 + $0x1], 1 }
 0x230   :  { %467 = vsyncpa [#allocation6], 1 }
 0x231   :  { %468 = vsyncpa [#allocation4], 1 }
 0x232   :  { %470 = vsyncpa [#allocation4 + $0x1], 1 }

</bundles_post_ra>
